<compile_context>
chip_gen: v5e
topology: v5e:2x2
jax: 0.10.0
libtpu: 0.0.40
codegen_flags: <defaults>
</compile_context>

<pallas_src>
import functools

import jax
import jax.numpy as jnp
from jax.experimental import pallas as pl
from jax.experimental.pallas import tpu as pltpu

BN_EPS = 1e-5


# ----------------------------------------------------------------------------
# Helpers
# ----------------------------------------------------------------------------
def _round_up(x, m):
    return (x + m - 1) // m * m


def _pad_and_tiles(n):
    """Padded node count and (tm, tk) tiles for the A_hat grid."""
    if n <= 512:
        n_pad = _round_up(n, 16)
        return n_pad, n_pad, n_pad          # full-array blocks, grid (1, 1)
    if n <= 1024:
        n_pad = _round_up(n, 512)
        return n_pad, 512, n_pad
    n_pad = _round_up(n, 1024)
    return n_pad, 512, 1024                 # 512x1024 bf16 A tile = 1 MiB


def fold_bn(w, b, gamma, beta, mean, var):
    """Fold eval-mode BatchNorm1d into the GCN weight/bias."""
    scale = gamma * jax.lax.rsqrt(var + BN_EPS)      # [1, H]
    w_eff = w * scale
    b_eff = b * scale + (beta - mean * scale)
    return w_eff, b_eff


# ----------------------------------------------------------------------------
# Pallas kernel: one GraphEncoder layer (BN already folded into W/b)
#   acc(i) = sum_k  A[i,k] @ (X[k] @ W)        (bf16 MXU, f32 accumulate)
#   out(i) = relu(acc(i) + b) (+ prev(i))      (only if apply_post)
# ----------------------------------------------------------------------------
def _layer_kernel(a_ref, x_ref, w_ref, b_ref, *rest,
                  apply_post: bool, add_skip: bool):
    if add_skip:
        prev_ref, o_ref, acc_ref = rest
    else:
        prev_ref = None
        o_ref, acc_ref = rest

    k = pl.program_id(1)

    @pl.when(k == 0)
    def _():
        acc_ref[...] = jnp.zeros_like(acc_ref)

    # (tk, Cin) @ (Cin, H) feature transform, then (tm, tk) @ (tk, H) aggregation.
    h = jnp.dot(x_ref[...], w_ref[...], preferred_element_type=jnp.float32)
    acc_ref[...] += jnp.dot(a_ref[...], h.astype(jnp.bfloat16),
                            preferred_element_type=jnp.float32)

    @pl.when(k == pl.num_programs(1) - 1)
    def _():
        m = acc_ref[...] + b_ref[...]              # bias (BN folded in wrapper)
        if apply_post:
            m = jnp.maximum(m, 0.0)                # relu; dropout=identity (eval)
            if add_skip:
                m = m + prev_ref[...]              # residual
        o_ref[...] = m.astype(o_ref.dtype)


def gcn_layer(a_hat, x, w, b, prev, *, apply_post, tm, tk):
    """One layer: a_hat [Np,Np] bf16, x [Np,Cin] bf16, w [Cin,H] bf16, b [1,H] f32,
    prev [Np,H] f32 or None."""
    n_pad = a_hat.shape[0]
    cin = x.shape[1]
    hidden = w.shape[1]
    grid = (n_pad // tm, n_pad // tk)
    add_skip = prev is not None

    in_specs = [
        pl.BlockSpec((tm, tk), lambda i, k: (i, k)),         # A_hat tile
        pl.BlockSpec((tk, cin), lambda i, k: (k, 0)),        # X k-block
        pl.BlockSpec((cin, hidden), lambda i, k: (0, 0)),    # W (resident)
        pl.BlockSpec((1, hidden), lambda i, k: (0, 0)),      # b (resident)
    ]
    args = [a_hat, x, w, b]
    if add_skip:
        in_specs.append(pl.BlockSpec((tm, hidden), lambda i, k: (i, 0)))
        args.append(prev)

    # VMEM budget: double-buffered A / X tiles dominate; generous headroom.
    tile_bytes = (2 * (tm * tk * 2 + tk * cin * 2)
                  + 2 * (tm * hidden * 4) * (2 if add_skip else 1)
                  + tm * hidden * 4
                  + 2 * (cin * hidden * 2 + hidden * 4))
    vmem_limit = min(48 << 20, 2 * tile_bytes + (8 << 20))

    flops = 2 * n_pad * n_pad * hidden + 2 * grid[0] * n_pad * cin * hidden
    bytes_accessed = (n_pad * n_pad * 2                       # A_hat (bf16)
                      + grid[0] * n_pad * cin * 2             # X re-read per row tile
                      + n_pad * hidden * 4 * (2 if add_skip else 1)
                      + cin * hidden * 2 + hidden * 4)

    kernel = functools.partial(_layer_kernel,
                               apply_post=apply_post, add_skip=add_skip)
    return pl.pallas_call(
        kernel,
        out_shape=jax.ShapeDtypeStruct((n_pad, hidden), jnp.float32),
        grid=grid,
        in_specs=in_specs,
        out_specs=pl.BlockSpec((tm, hidden), lambda i, k: (i, 0)),
        scratch_shapes=[pltpu.VMEM((tm, hidden), jnp.float32)],
        compiler_params=pltpu.CompilerParams(
            dimension_semantics=("parallel", "arbitrary"),
            vmem_limit_bytes=int(vmem_limit)),
        cost_estimate=pl.CostEstimate(flops=int(flops), transcendentals=0,
                                      bytes_accessed=int(bytes_accessed)),
    )(*args)


# ----------------------------------------------------------------------------
# Glue: dense normalized adjacency from edge_index (PyG gcn_norm semantics)
# ----------------------------------------------------------------------------
def build_norm_adj(edge_index, num_nodes):
    src, dst = edge_index[0], edge_index[1]
    loop = jnp.arange(num_nodes, dtype=edge_index.dtype)
    src = jnp.concatenate([src, loop])          # add self-loops
    dst = jnp.concatenate([dst, loop])
    w = jnp.ones(src.shape, jnp.float32)
    deg = jnp.zeros((num_nodes,), jnp.float32).at[dst].add(w)
    dinv = jnp.where(deg > 0, 1.0 / jnp.sqrt(deg), 0.0)
    norm = dinv[src] * dinv[dst]
    a_hat = jnp.zeros((num_nodes, num_nodes), jnp.float32).at[dst, src].add(norm)
    return a_hat


# ----------------------------------------------------------------------------
# GraphEncoder forward (Python loop over layers; one tiled Pallas call each)
# ----------------------------------------------------------------------------
def graph_encoder_forward(x, edge_index, params,
                          *, num_layers, use_bn, use_skip, activate_last):
    n = x.shape[0]
    a_hat = build_norm_adj(edge_index, n)
    n_pad, tm, tk = _pad_and_tiles(n)
    a_hat = jnp.pad(a_hat, ((0, n_pad - n), (0, n_pad - n))).astype(jnp.bfloat16)
    cur = jnp.pad(x.astype(jnp.float32), ((0, n_pad - n), (0, 0)))
    prev = None
    for i in range(num_layers):
        p = params[i]
        apply_post = (i != num_layers - 1) or activate_last
        if apply_post and use_bn:
            w_eff, b_eff = fold_bn(p['w'], p['b'], p['gamma'], p['beta'],
                                   p['mean'], p['var'])
        else:
            w_eff, b_eff = p['w'], p['b']
        prev_arg = prev if (apply_post and use_skip and prev is not None) else None
        cur = gcn_layer(a_hat, cur.astype(jnp.bfloat16),
                        w_eff.astype(jnp.bfloat16), b_eff.astype(jnp.float32),
                        prev_arg, apply_post=apply_post, tm=tm, tk=tk)
        if apply_post:
            prev = cur
    return cur[:n]


# ----------------------------------------------------------------------------
# Pure-JAX references
#   match_kernel_numerics=True  : identical bf16/fold math as the kernel (tight)
#   match_kernel_numerics=False : f32 PyTorch-semantics math (loose sanity check)
# ----------------------------------------------------------------------------
def reference_forward(x, edge_index, params, *, num_layers, use_bn, use_skip,
                      activate_last, match_kernel_numerics=False):
    n = x.shape[0]
    a_hat = build_norm_adj(edge_index, n)
    if match_kernel_numerics:
        a_hat = a_hat.astype(jnp.bfloat16)
    prev = None
    cur = x.astype(jnp.float32)
    for i in range(num_layers):
        p = params[i]
        apply_post = (i != num_layers - 1) or activate_last
        if match_kernel_numerics:
            if apply_post and use_bn:
                w_eff, b_eff = fold_bn(p['w'], p['b'], p['gamma'], p['beta'],
                                       p['mean'], p['var'])
            else:
                w_eff, b_eff = p['w'], p['b']
            h = jnp.dot(cur.astype(jnp.bfloat16), w_eff.astype(jnp.bfloat16),
                        preferred_element_type=jnp.float32)
            m = jnp.dot(a_hat, h.astype(jnp.bfloat16),
                        preferred_element_type=jnp.float32) + b_eff
            if apply_post:
                m = jnp.maximum(m, 0.0)
                if use_skip and prev is not None:
                    m = m + prev
                prev = m
            cur = m
        else:
            m = a_hat @ (cur @ p['w']) + p['b']
            if apply_post:
                if use_bn:
                    m = (m - p['mean']) / jnp.sqrt(p['var'] + BN_EPS) * p['gamma'] + p['beta']
                m = jnp.maximum(m, 0.0)
                if use_skip and prev is not None:
                    m = m + prev
                prev = m
            cur = m
    return cur


if __name__ == "__main__":
    # Small, module-consistent shapes.
    N = 16                 # number of graph nodes
    E = 32                 # number of edges
    GLOBAL_CH = 8          # args.global_channels (input feature dim)
    HIDDEN_CH = 32         # args.hidden_channels
    NUM_LAYERS = 3         # args.num_encoder_layers

    key = jax.random.PRNGKey(0)
    k_x, k_src, k_dst, k_par = jax.random.split(key, 4)

    x = jax.random.normal(k_x, (N, GLOBAL_CH), jnp.float32)
    edge_index = jnp.stack([
        jax.random.randint(k_src, (E,), 0, N, dtype=jnp.int32),
        jax.random.randint(k_dst, (E,), 0, N, dtype=jnp.int32),
    ], axis=0)

    # Deterministic parameter init (synthetic; shapes from the module's build()).
    params = []
    pk = k_par
    for i in range(NUM_LAYERS):
        c_in = GLOBAL_CH if i == 0 else HIDDEN_CH
        pk, kw, kb, kg, kbe, km, kv = jax.random.split(pk, 7)
        params.append({
            'w':     jax.random.normal(kw, (c_in, HIDDEN_CH), jnp.float32) * 0.2,
            'b':     jax.random.normal(kb, (1, HIDDEN_CH), jnp.float32) * 0.1,
            'gamma': 1.0 + 0.1 * jax.random.normal(kg, (1, HIDDEN_CH), jnp.float32),
            'beta':  0.1 * jax.random.normal(kbe, (1, HIDDEN_CH), jnp.float32),
            'mean':  0.1 * jax.random.normal(km, (1, HIDDEN_CH), jnp.float32),
            'var':   0.5 + jnp.abs(jax.random.normal(kv, (1, HIDDEN_CH), jnp.float32)),
        })

    cfg = dict(num_layers=NUM_LAYERS, use_bn=True, use_skip=True,
               activate_last=True)

    out = graph_encoder_forward(x, edge_index, params, **cfg)
    out = jax.block_until_ready(out)
    assert out.shape == (N, HIDDEN_CH)

    # Tight check against a reference using the exact same bf16/BN-fold math.
    ref_exact = reference_forward(x, edge_index, params,
                                  match_kernel_numerics=True, **cfg)
    ref_exact = jax.block_until_ready(ref_exact)
    assert jnp.allclose(out, ref_exact, atol=1e-3, rtol=1e-3), \
        "mismatch vs bf16-matched reference"

    # Loose sanity check against the pure-f32 PyTorch-semantics reference
    # (bf16 MXU inputs lose ~3 decimal digits).
    ref_f32 = reference_forward(x, edge_index, params,
                                match_kernel_numerics=False, **cfg)
    ref_f32 = jax.block_until_ready(ref_f32)
    rel = jnp.max(jnp.abs(out - ref_f32)) / (jnp.max(jnp.abs(ref_f32)) + 1e-6)
    assert rel < 5e-2, f"relative deviation vs f32 reference too large: {rel}"

    print("KERNEL_OK")
</pallas_src>

<mosaic_0001>
module attributes {stable_mosaic.version = 11 : i64} {
  func.func @_layer_kernel(%arg0: i32, %arg1: i32, %arg2: memref<16x16xbf16, #tpu.memory_space<vmem>>, %arg3: memref<16x8xbf16, #tpu.memory_space<vmem>>, %arg4: memref<8x32xbf16, #tpu.memory_space<vmem>>, %arg5: memref<1x32xf32, #tpu.memory_space<vmem>>, %arg6: memref<16x32xf32, #tpu.memory_space<vmem>>, %arg7: memref<16x32xf32, #tpu.memory_space<vmem>>) attributes {dimension_semantics = [#tpu.dimension_semantics<parallel>, #tpu.dimension_semantics<arbitrary>], iteration_bounds = array<i64: 1, 1>, scalar_prefetch = 0 : i64, scratch_operands = 1 : i64, tpu.core_type = #tpu.core_type<tc>, window_params = [{transform_indices = @transform_0, window_bounds = array<i64: 16, 16>}, {transform_indices = @transform_1, window_bounds = array<i64: 16, 8>}, {pipeline_mode = #tpu.pipeline_mode<synchronous>, transform_indices = @transform_2, window_bounds = array<i64: 8, 32>}, {pipeline_mode = #tpu.pipeline_mode<synchronous>, transform_indices = @transform_3, window_bounds = array<i64: 1, 32>}, {transform_indices = @transform_4, window_bounds = array<i64: 16, 32>}]} {
    %c0_i32 = arith.constant 0 : i32
    %0 = arith.cmpi eq, %arg1, %c0_i32 : i32
    %1 = arith.extui %0 : i1 to i32
    %c0_i32_0 = arith.constant 0 : i32
    %2 = arith.cmpi ne, %1, %c0_i32_0 : i32
    scf.if %2 {
      %cst_13 = arith.constant 0.000000e+00 : f32
      %15 = vector.broadcast %cst_13 : f32 to vector<16x32xf32>
      %c0_14 = arith.constant 0 : index
      %c0_15 = arith.constant 0 : index
      %16 = vector.load %arg7[%c0_14, %c0_15] : memref<16x32xf32, #tpu.memory_space<vmem>>, vector<16x32xf32>
      tpu.vector_store %arg7[%c0_14, %c0_15], %15 {strides = array<i32>} : memref<16x32xf32, #tpu.memory_space<vmem>>, vector<16x32xf32>,
    } else {
    }
    %c0 = arith.constant 0 : index
    %c0_1 = arith.constant 0 : index
    %3 = vector.load %arg3[%c0, %c0_1] : memref<16x8xbf16, #tpu.memory_space<vmem>>, vector<16x8xbf16>
    %c0_2 = arith.constant 0 : index
    %c0_3 = arith.constant 0 : index
    %4 = vector.load %arg4[%c0_2, %c0_3] : memref<8x32xbf16, #tpu.memory_space<vmem>>, vector<8x32xbf16>
    %cst = arith.constant dense<0.000000e+00> : vector<16x32xf32>
    %5 = tpu.matmul %3, %4, %cst {dimension_numbers = #tpu.dot_dimension_numbers<[1], [0], [0], [1], [0, 0, 1, 1], [], []>} : vector<16x8xbf16>, vector<8x32xbf16>, vector<16x32xf32> -> vector<16x32xf32>
    %c0_4 = arith.constant 0 : index
    %c0_5 = arith.constant 0 : index
    %6 = vector.load %arg7[%c0_4, %c0_5] : memref<16x32xf32, #tpu.memory_space<vmem>>, vector<16x32xf32>
    %c0_6 = arith.constant 0 : index
    %c0_7 = arith.constant 0 : index
    %7 = vector.load %arg2[%c0_6, %c0_7] : memref<16x16xbf16, #tpu.memory_space<vmem>>, vector<16x16xbf16>
    %8 = arith.truncf %5 : vector<16x32xf32> to vector<16x32xbf16>
    %cst_8 = arith.constant dense<0.000000e+00> : vector<16x32xf32>
    %9 = tpu.matmul %7, %8, %cst_8 {dimension_numbers = #tpu.dot_dimension_numbers<[1], [0], [0], [1], [0, 0, 1, 1], [], []>} : vector<16x16xbf16>, vector<16x32xbf16>, vector<16x32xf32> -> vector<16x32xf32>
    %10 = arith.addf %6, %9 : vector<16x32xf32>
    %c0_9 = arith.constant 0 : index
    %c0_10 = arith.constant 0 : index
    %11 = vector.load %arg7[%c0_9, %c0_10] : memref<16x32xf32, #tpu.memory_space<vmem>>, vector<16x32xf32>
    tpu.vector_store %arg7[%c0_9, %c0_10], %10 {strides = array<i32>} : memref<16x32xf32, #tpu.memory_space<vmem>>, vector<16x32xf32>,
    %c0_i32_11 = arith.constant 0 : i32
    %12 = arith.cmpi eq, %arg1, %c0_i32_11 : i32
    %13 = arith.extui %12 : i1 to i32
    %c0_i32_12 = arith.constant 0 : i32
    %14 = arith.cmpi ne, %13, %c0_i32_12 : i32
    scf.if %14 {
      %c0_13 = arith.constant 0 : index
      %c0_14 = arith.constant 0 : index
      %15 = vector.load %arg7[%c0_13, %c0_14] : memref<16x32xf32, #tpu.memory_space<vmem>>, vector<16x32xf32>
      %c0_15 = arith.constant 0 : index
      %c0_16 = arith.constant 0 : index
      %16 = vector.load %arg5[%c0_15, %c0_16] : memref<1x32xf32, #tpu.memory_space<vmem>>, vector<1x32xf32>
      %17 = vector.broadcast %16 : vector<1x32xf32> to vector<16x32xf32>
      %18 = arith.addf %15, %17 : vector<16x32xf32>
      %cst_17 = arith.constant 0.000000e+00 : f32
      %19 = vector.broadcast %cst_17 : f32 to vector<16x32xf32>
      %20 = arith.maximumf %18, %19 : vector<16x32xf32>
      %c0_18 = arith.constant 0 : index
      %c0_19 = arith.constant 0 : index
      %21 = vector.load %arg6[%c0_18, %c0_19] : memref<16x32xf32, #tpu.memory_space<vmem>>, vector<16x32xf32>
      tpu.vector_store %arg6[%c0_18, %c0_19], %20 {strides = array<i32>} : memref<16x32xf32, #tpu.memory_space<vmem>>, vector<16x32xf32>,
    } else {
    }
    return
  }
  func.func @transform_0(%arg0: i32, %arg1: i32) -> (i32, i32) {
    %c0_i32 = arith.constant 0 : i32
    return %arg0, %arg1 : i32, i32
  }
  func.func @transform_1(%arg0: i32, %arg1: i32) -> (i32, i32) {
    %c0_i32 = arith.constant 0 : i32
    %c0_i32_0 = arith.constant 0 : i32
    return %arg1, %c0_i32 : i32, i32
  }
  func.func @transform_2(%arg0: i32, %arg1: i32) -> (i32, i32) {
    %c0_i32 = arith.constant 0 : i32
    %c0_i32_0 = arith.constant 0 : i32
    %c0_i32_1 = arith.constant 0 : i32
    return %c0_i32, %c0_i32_0 : i32, i32
  }
  func.func @transform_3(%arg0: i32, %arg1: i32) -> (i32, i32) {
    %c0_i32 = arith.constant 0 : i32
    %c0_i32_0 = arith.constant 0 : i32
    %c0_i32_1 = arith.constant 0 : i32
    return %c0_i32, %c0_i32_0 : i32, i32
  }
  func.func @transform_4(%arg0: i32, %arg1: i32) -> (i32, i32) {
    %c0_i32 = arith.constant 0 : i32
    %c0_i32_0 = arith.constant 0 : i32
    return %arg0, %c0_i32 : i32, i32
  }
}

</mosaic_0001>

<bundles_post_ra>
// kernel: tpu_custom_call.1
= control target key start
LH: loop header
LB: loop body
LE: loop exit
PB: predicated region body
PF: predicated region fallthrough
CT: control target
= control target key end

     0   :  { %vm38_vm0 = vcmask 1043456   ;;  %s215_s0 = inlined_call_operand.vmem [shape: bf16[16,16], index: 0, kind: input, shape index: {}]   ;;  %s216_s1 = inlined_call_operand.vmem [shape: bf16[16,8], index: 1, kind: input, shape index: {}]   ;;  %s217_s2 = inlined_call_operand.vmem [shape: bf16[8,32], index: 2, kind: input, shape index: {}]   ;;  %s218_s3 = inlined_call_operand.vmem [shape: f32[1,32], index: 3, kind: input, shape index: {}]   ;;  %s219_s4 = inlined_call_operand.hbm [shape: f32[16,32], index: 4, kind: output, shape index: {}]  }
   0x1   :  { %v28_v0 = vld [vmem:[%s217_s2] sm:$0xf] }
   0x2   :  { %v40_v1 = vsel %vm38_vm0, %v28_v0, 0  ;;  %v132_v2 = vld [vmem:[%s216_s1] sm:$0xff] }
   0x3   :  { %9 = vsyncpa [#allocation4], 0  ;;  %49 = vmatpush.bf16.msra.mxu0 %v40_v1  ;;  %vm34_vm1 = vcmask 64512   ;;  %vm23_vm2 = vcmask 261120   ;;  %v165_v3 = vmov 0.0   ;;  %v133_v7 = vld [vmem:[%s215_s0] sm:$0xff] }
   0x4   :  { %24 = vst.msk [vmem:[#allocation2] sm:$0xff] %vm23_vm2, %v165_v3  ;;  %vm66_vm3 = vcmask 130048   ;;  %v138_v12 = vld [vmem:[%s218_s3] ss:$0 sm:$0xff]  ;;  %s166_s0 = smov [#allocation3]   ;;  %s110_s24 = sshll.u32 %s219_s4, 4  ;;  %s111_s24 = int_to_ptr.hbm [resolvable:$true] %s110_s24 }
   0x5   :  { %25 = vst.msk [vmem:[#allocation2 + $0x8] sm:$0xff] %vm23_vm2, %v165_v3  ;;  %s108_s21 = sshll.u32 %s166_s0, 4  ;;  %s167_s3 = smov 128   ;;  %s109_s21 = int_to_ptr.vmem [resolvable:$true] %s108_s21 }
   0x6   :  { %126 = vmatmul.msk.bf16.vlgmr.msra.gmra.mxu0 %vm34_vm1, %v132_v2  ;;  %s168_s25 = smov 8  }
   0xb   :  { %v56_v8 = vld [vmem:[#allocation2] sm:$0xff] }
   0xc   :  { %v57_v11 = vld [vmem:[#allocation2 + $0x8] sm:$0xff] }
  0x83   :  { %v51_v4 = vpop.f32.mrf.mxu0 }
  0x8b   :  { %v53_v5 = vpop.f32.mrf.mxu0 }
  0x8c   :  { %v60_v6 = vpack.c.bf16 %v53_v5, %v51_v4 }
  0x8e   :  { %77 = vmatpush.bf16.msra.mxu1 %v60_v6 }
  0x91   :  { %131 = vmatmul.msk.bf16.vlgmr.msra.gmra.mxu1 %vm66_vm3, %v133_v7 }
 0x10e   :  { %v79_v9 = vpop.f32.mrf.mxu1 }
 0x10f   :  { %v84_v10 = vadd.f32 %v79_v9, %v56_v8 }
 0x111   :  { %87 = vst.msk [vmem:[#allocation2] sm:$0xff] %vm23_vm2, %v84_v10 }
 0x116   :  { %v81_v13 = vpop.f32.mrf.mxu1 }
 0x117   :  { %v85_v14 = vadd.f32 %v81_v13, %v57_v11 }
 0x118   :  { %v92_v15 = vld [vmem:[#allocation2] sm:$0xff] }
 0x119   :  { %88 = vst.msk [vmem:[#allocation2 + $0x8] sm:$0xff] %vm23_vm2, %v85_v14  ;;  %v98_v16 = vadd.f32 %v138_v12, %v92_v15 }
 0x11b   :  { %v100_v17 = vmax.f32 %v98_v16, 0.0 }
 0x11d   :  { %102 = vst.msk [vmem:[#allocation3] sm:$0xff] %vm23_vm2, %v100_v17 }
 0x120   :  { %v93_v18 = vld [vmem:[#allocation2 + $0x8] sm:$0xff] }
 0x121   :  { %v99_v19 = vadd.f32 %v138_v12, %v93_v18 }
 0x123   :  { %v101_v20 = vmax.f32 %v99_v19, 0.0 }
 0x125   :  { %103 = vst.msk [vmem:[#allocation3 + $0x8] sm:$0xff] %vm23_vm2, %v101_v20 }
 0x126   :  { %116 = dma.vmem_to_hbm [thread:$0]  %s109_s21, 256, %s111_s24, [#allocation4], %s167_s3, %s167_s3, %s168_s25  }
 0x127   :  { %163 = dma.done.wait [#allocation4], 256  }
 0x128   :  { %164 = vsyncadd [#allocation4], 4294967040 }
 0x129   :  { %121 = vsyncpa [#allocation4], 1 }

</bundles_post_ra>
